<compile_context>
chip_gen: v7x
topology: tpu7x:2x2x1
jax: 0.10.0
libtpu: 0.0.40
codegen_flags: <defaults>
</compile_context>

<pallas_src>
import functools

import jax
import jax.numpy as jnp
from jax.experimental import pallas as pl
from jax.experimental.pallas import tpu as pltpu


def _round_up(x, m):
    return ((x + m - 1) // m) * m


def _choose_batch_tiling(B, block_b):
    """Pick (tile_rows, n_tiles). Prefer one big tile; if several tiles are
    needed, use an even count so v7x's 2 TensorCores split the grid evenly."""
    rb = _round_up(B, 8)
    if rb <= block_b:
        return rb, 1
    n_tiles = -(-B // block_b)          # ceil
    if n_tiles % 2:
        n_tiles += 1                    # even tile count for 2-TC sharding
    tb = _round_up(-(-B // n_tiles), 8)
    n_tiles = -(-B // tb)
    return tb, n_tiles


# ---------------------------------------------------------------------------
# Fused kernel: both MLP heads (block-diag fused) + Cauchy reparameterization
# ---------------------------------------------------------------------------

def _fused_cauchy_kernel(x_ref, u_ref, wf_ref, bf_ref, *refs,
                         out_dim, h_mean_dim, n_fused_rest,
                         n_mean_rest, n_var_rest):
    """Whole forward for one batch tile.

    refs layout:
      if n_fused_rest > 0 : 2*n_fused_rest refs = block-diag (W, b) per depth
      else                : 2*n_mean_rest + 2*n_var_rest separate (W, b)
      last three refs     : z_ref, mu_ref, logvar_ref
    """
    n_w = 2 * (n_fused_rest if n_fused_rest > 0 else (n_mean_rest + n_var_rest))
    w_refs = refs[:n_w]
    z_ref, mu_ref, lv_ref = refs[n_w], refs[n_w + 1], refs[n_w + 2]

    x = x_ref[...]

    # --- fused first layer: one MXU push over [D, Hm + Hv] ------------------
    h = jnp.dot(x, wf_ref[...], preferred_element_type=jnp.float32) + bf_ref[...]

    if n_fused_rest > 0:
        # Equal-depth heads: keep the activation concatenated and use
        # block-diagonal weights for every remaining depth level.
        for li in range(n_fused_rest):
            h = jnp.maximum(h, 0.0)                 # ReLU before each rest layer
            w_ref, b_ref = w_refs[2 * li], w_refs[2 * li + 1]
            h = jnp.dot(h, w_ref[...],
                        preferred_element_type=jnp.float32) + b_ref[...]
        mu = h[:, :out_dim]
        logvar = h[:, out_dim:]
    else:
        # Fallback: heads with different depths -> split and process separately.
        h_m = h[:, :h_mean_dim]
        h_v = h[:, h_mean_dim:]
        if n_mean_rest > 0:
            h_m = jnp.maximum(h_m, 0.0)
        if n_var_rest > 0:
            h_v = jnp.maximum(h_v, 0.0)
        idx = 0
        for li in range(n_mean_rest):
            w_ref, b_ref = w_refs[idx], w_refs[idx + 1]
            idx += 2
            h_m = jnp.dot(h_m, w_ref[...],
                          preferred_element_type=jnp.float32) + b_ref[...]
            if li < n_mean_rest - 1:
                h_m = jnp.maximum(h_m, 0.0)
        for li in range(n_var_rest):
            w_ref, b_ref = w_refs[idx], w_refs[idx + 1]
            idx += 2
            h_v = jnp.dot(h_v, w_ref[...],
                          preferred_element_type=jnp.float32) + b_ref[...]
            if li < n_var_rest - 1:
                h_v = jnp.maximum(h_v, 0.0)
        mu, logvar = h_m, h_v

    # --- Cauchy reparameterization (noise is a kernel input, like torch.rand)
    u = u_ref[...]
    std = jnp.exp(0.5 * logvar)
    t = 3.14 * (u - 0.5)                  # |t| < pi/2, tan stays finite
    tan_t = jnp.sin(t) / jnp.cos(t)       # exact divide; EUP handles sin/cos/exp
    z = mu + std * tan_t

    # Three independent stores -> no in-kernel lane concat, no wrapper slicing.
    z_ref[...] = z
    mu_ref[...] = mu
    lv_ref[...] = logvar


# ---------------------------------------------------------------------------
# Wrapper (one pallas_call for the whole forward)
# ---------------------------------------------------------------------------

def cauchy_generator_forward(params, x, rng_key=None, *, uniform=None,
                             block_b=512):
    mean_params = params["mean_layers"]
    var_params = params["var_layers"]
    B, D = x.shape
    out_dim = mean_params[-1][0].shape[1]

    # Fuse the first-layer weights of both heads (they share the input x).
    w0m, b0m = mean_params[0]
    w0v, b0v = var_params[0]
    h_mean_dim = w0m.shape[1]
    wf = jnp.concatenate([w0m, w0v], axis=1)
    bf = jnp.concatenate([b0m, b0v], axis=1)          # biases stored as (1, N)

    rest_mean = mean_params[1:]
    rest_var = var_params[1:]

    flat_rest = []
    if len(rest_mean) == len(rest_var) and len(rest_mean) > 0:
        # Block-diagonal fusion of every remaining depth level.
        n_fused_rest = len(rest_mean)
        n_mean_rest = n_var_rest = 0
        for (wm, bm), (wv, bv) in zip(rest_mean, rest_var):
            im, om = wm.shape
            iv, ov = wv.shape
            w = jnp.zeros((im + iv, om + ov), dtype=wm.dtype)
            w = w.at[:im, :om].set(wm)
            w = w.at[im:, om:].set(wv)
            b = jnp.concatenate([bm, bv], axis=1)
            flat_rest += [w, b]
    else:
        n_fused_rest = 0
        n_mean_rest = len(rest_mean)
        n_var_rest = len(rest_var)
        for w, b in list(rest_mean) + list(rest_var):
            flat_rest += [w, b]

    # Uniform noise (same role as torch.rand in the reference).
    if uniform is None:
        uniform = jax.random.uniform(rng_key, (B, out_dim), dtype=jnp.float32)
    u = uniform.astype(jnp.float32)

    # Batch tiling (grid over batch, weights resident across all tiles).
    tb, n_tiles = _choose_batch_tiling(B, block_b)
    b_pad = tb * n_tiles
    if b_pad != B:
        x = jnp.pad(x, ((0, b_pad - B), (0, 0)))
        u = jnp.pad(u, ((0, b_pad - B), (0, 0)))

    resident = lambda i: (0, 0)                       # weights: same block each tile
    in_specs = [pl.BlockSpec((tb, D), lambda i: (i, 0)),
                pl.BlockSpec((tb, out_dim), lambda i: (i, 0))]
    in_specs += [pl.BlockSpec(a.shape, resident) for a in [wf, bf] + flat_rest]

    out_block = pl.BlockSpec((tb, out_dim), lambda i: (i, 0))
    out_shape = tuple(jax.ShapeDtypeStruct((b_pad, out_dim), jnp.float32)
                      for _ in range(3))

    kernel = functools.partial(
        _fused_cauchy_kernel,
        out_dim=out_dim,
        h_mean_dim=h_mean_dim,
        n_fused_rest=n_fused_rest,
        n_mean_rest=n_mean_rest,
        n_var_rest=n_var_rest,
    )

    z, mu, logvar = pl.pallas_call(
        kernel,
        out_shape=out_shape,
        grid=(n_tiles,),
        in_specs=in_specs,
        out_specs=(out_block, out_block, out_block),
        compiler_params=pltpu.CompilerParams(
            dimension_semantics=("parallel",),       # shard tiles over v7x's 2 TCs
            vmem_limit_bytes=64 * 1024 * 1024,       # explicit budget (v7x: 64 MiB)
        ),
    )(x, u, wf, bf, *flat_rest)

    if b_pad != B:
        z, mu, logvar = z[:B], mu[:B], logvar[:B]
    return z, {"mean": mu, "logstd": logvar}


# ---------------------------------------------------------------------------
# Parameter init (weights [in, out], biases (1, out)) + pure-JAX reference
# ---------------------------------------------------------------------------

def init_relu_sequential(key, input_dim, layers, output_dim):
    dims = [input_dim] + list(layers) + [output_dim]
    params = []
    for i in range(len(dims) - 1):
        key, wk, bk = jax.random.split(key, 3)
        w = 0.1 * jax.random.normal(wk, (dims[i], dims[i + 1]), dtype=jnp.float32)
        b = 0.1 * jax.random.normal(bk, (1, dims[i + 1]), dtype=jnp.float32)
        params.append((w, b))
    return params


def init_cauchy_generator(key, input_dim, mean_layers_dim, mean_output_dim,
                          var_layers_dim):
    k_mean, k_var = jax.random.split(key)
    return {
        "mean_layers": init_relu_sequential(k_mean, input_dim, mean_layers_dim,
                                            mean_output_dim),
        "var_layers": init_relu_sequential(k_var, input_dim, var_layers_dim,
                                           mean_output_dim),
    }


def _mlp_ref(x, params):
    """Pure-JAX reference MLP (ReLU after all but last layer)."""
    h = x
    n = len(params)
    for i, (w, b) in enumerate(params):
        h = jnp.dot(h, w, precision=jax.lax.Precision.HIGHEST) + b
        if i < n - 1:
            h = jnp.maximum(h, 0.0)
    return h


# ---------------------------------------------------------------------------
# Main
# ---------------------------------------------------------------------------

if __name__ == "__main__":
    batch = 8
    input_dim = 32
    mean_layers_dim = [32]
    var_layers_dim = [32]
    mean_output_dim = 16

    root_key = jax.random.PRNGKey(0)
    k_params, k_input, k_noise = jax.random.split(root_key, 3)

    params = init_cauchy_generator(k_params, input_dim, mean_layers_dim,
                                   mean_output_dim, var_layers_dim)
    x = jax.random.normal(k_input, (batch, input_dim), dtype=jnp.float32)
    # Explicit uniform noise so z can be checked exactly against the formula.
    u = jax.random.uniform(k_noise, (batch, mean_output_dim), dtype=jnp.float32)

    fwd = jax.jit(lambda p, xx, uu: cauchy_generator_forward(p, xx, uniform=uu))
    z, stats = fwd(params, x, u)
    jax.block_until_ready((z, stats))

    # Shape checks.
    assert z.shape == (batch, mean_output_dim)
    assert stats["mean"].shape == (batch, mean_output_dim)
    assert stats["logstd"].shape == (batch, mean_output_dim)

    # Correctness vs. pure-JAX reference.
    mu_ref = _mlp_ref(x, params["mean_layers"])
    lv_ref = _mlp_ref(x, params["var_layers"])
    z_ref = mu_ref + jnp.exp(0.5 * lv_ref) * jnp.tan(3.14 * (u - 0.5))

    assert jnp.allclose(stats["mean"], mu_ref, atol=1e-2, rtol=1e-2)
    assert jnp.allclose(stats["logstd"], lv_ref, atol=1e-2, rtol=1e-2)
    assert jnp.allclose(z, z_ref, atol=1e-2, rtol=1e-2)
    assert bool(jnp.all(jnp.isfinite(z)))

    print("KERNEL_OK")
</pallas_src>

<mosaic_0001>
module attributes {stable_mosaic.version = 11 : i64} {
  func.func @_fused_cauchy_kernel(%arg0: i32, %arg1: memref<8x32xf32, #tpu.memory_space<vmem>>, %arg2: memref<8x16xf32, #tpu.memory_space<vmem>>, %arg3: memref<32x64xf32, #tpu.memory_space<vmem>>, %arg4: memref<1x64xf32, #tpu.memory_space<vmem>>, %arg5: memref<64x32xf32, #tpu.memory_space<vmem>>, %arg6: memref<1x32xf32, #tpu.memory_space<vmem>>, %arg7: memref<8x16xf32, #tpu.memory_space<vmem>>, %arg8: memref<8x16xf32, #tpu.memory_space<vmem>>, %arg9: memref<8x16xf32, #tpu.memory_space<vmem>>) attributes {dimension_semantics = [#tpu.dimension_semantics<parallel>], iteration_bounds = array<i64: 1>, scalar_prefetch = 0 : i64, scratch_operands = 0 : i64, tpu.core_type = #tpu.core_type<tc>, window_params = [{transform_indices = @transform_0, window_bounds = array<i64: 8, 32>}, {transform_indices = @transform_1, window_bounds = array<i64: 8, 16>}, {pipeline_mode = #tpu.pipeline_mode<synchronous>, transform_indices = @transform_2, window_bounds = array<i64: 32, 64>}, {pipeline_mode = #tpu.pipeline_mode<synchronous>, transform_indices = @transform_3, window_bounds = array<i64: 1, 64>}, {pipeline_mode = #tpu.pipeline_mode<synchronous>, transform_indices = @transform_4, window_bounds = array<i64: 64, 32>}, {pipeline_mode = #tpu.pipeline_mode<synchronous>, transform_indices = @transform_5, window_bounds = array<i64: 1, 32>}, {transform_indices = @transform_6, window_bounds = array<i64: 8, 16>}, {transform_indices = @transform_7, window_bounds = array<i64: 8, 16>}, {transform_indices = @transform_8, window_bounds = array<i64: 8, 16>}]} {
    %c0 = arith.constant 0 : index
    %c0_0 = arith.constant 0 : index
    %0 = vector.load %arg1[%c0, %c0_0] : memref<8x32xf32, #tpu.memory_space<vmem>>, vector<8x32xf32>
    %c0_1 = arith.constant 0 : index
    %c0_2 = arith.constant 0 : index
    %1 = vector.load %arg3[%c0_1, %c0_2] : memref<32x64xf32, #tpu.memory_space<vmem>>, vector<32x64xf32>
    %cst = arith.constant dense<0.000000e+00> : vector<8x64xf32>
    %2 = tpu.matmul %0, %1, %cst {dimension_numbers = #tpu.dot_dimension_numbers<[1], [0], [0], [1], [0, 0, 1, 1], [], []>} : vector<8x32xf32>, vector<32x64xf32>, vector<8x64xf32> -> vector<8x64xf32>
    %c0_3 = arith.constant 0 : index
    %c0_4 = arith.constant 0 : index
    %3 = vector.load %arg4[%c0_3, %c0_4] : memref<1x64xf32, #tpu.memory_space<vmem>>, vector<1x64xf32>
    %4 = vector.broadcast %3 : vector<1x64xf32> to vector<8x64xf32>
    %5 = arith.addf %2, %4 : vector<8x64xf32>
    %cst_5 = arith.constant 0.000000e+00 : f32
    %6 = vector.broadcast %cst_5 : f32 to vector<8x64xf32>
    %7 = arith.maximumf %5, %6 : vector<8x64xf32>
    %c0_6 = arith.constant 0 : index
    %c0_7 = arith.constant 0 : index
    %8 = vector.load %arg5[%c0_6, %c0_7] : memref<64x32xf32, #tpu.memory_space<vmem>>, vector<64x32xf32>
    %cst_8 = arith.constant dense<0.000000e+00> : vector<8x32xf32>
    %9 = tpu.matmul %7, %8, %cst_8 {dimension_numbers = #tpu.dot_dimension_numbers<[1], [0], [0], [1], [0, 0, 1, 1], [], []>} : vector<8x64xf32>, vector<64x32xf32>, vector<8x32xf32> -> vector<8x32xf32>
    %c0_9 = arith.constant 0 : index
    %c0_10 = arith.constant 0 : index
    %10 = vector.load %arg6[%c0_9, %c0_10] : memref<1x32xf32, #tpu.memory_space<vmem>>, vector<1x32xf32>
    %11 = vector.broadcast %10 : vector<1x32xf32> to vector<8x32xf32>
    %12 = arith.addf %9, %11 : vector<8x32xf32>
    %13 = vector.extract_strided_slice %12 {offsets = [0, 0], sizes = [8, 16], strides = [1, 1]} : vector<8x32xf32> to vector<8x16xf32>
    %14 = vector.extract_strided_slice %12 {offsets = [0, 16], sizes = [8, 16], strides = [1, 1]} : vector<8x32xf32> to vector<8x16xf32>
    %c0_11 = arith.constant 0 : index
    %c0_12 = arith.constant 0 : index
    %15 = vector.load %arg2[%c0_11, %c0_12] : memref<8x16xf32, #tpu.memory_space<vmem>>, vector<8x16xf32>
    %cst_13 = arith.constant 5.000000e-01 : f32
    %16 = vector.broadcast %cst_13 : f32 to vector<8x16xf32>
    %17 = arith.mulf %16, %14 : vector<8x16xf32>
    %18 = math.exp %17 : vector<8x16xf32>
    %cst_14 = arith.constant 5.000000e-01 : f32
    %19 = vector.broadcast %cst_14 : f32 to vector<8x16xf32>
    %20 = arith.subf %15, %19 : vector<8x16xf32>
    %cst_15 = arith.constant 3.140000e+00 : f32
    %21 = vector.broadcast %cst_15 : f32 to vector<8x16xf32>
    %22 = arith.mulf %21, %20 : vector<8x16xf32>
    %23 = math.sin %22 : vector<8x16xf32>
    %24 = math.cos %22 : vector<8x16xf32>
    %25 = arith.divf %23, %24 : vector<8x16xf32>
    %26 = arith.mulf %18, %25 : vector<8x16xf32>
    %27 = arith.addf %13, %26 : vector<8x16xf32>
    %c0_16 = arith.constant 0 : index
    %c0_17 = arith.constant 0 : index
    %28 = vector.load %arg7[%c0_16, %c0_17] : memref<8x16xf32, #tpu.memory_space<vmem>>, vector<8x16xf32>
    tpu.vector_store %arg7[%c0_16, %c0_17], %27 {strides = array<i32>} : memref<8x16xf32, #tpu.memory_space<vmem>>, vector<8x16xf32>,
    %c0_18 = arith.constant 0 : index
    %c0_19 = arith.constant 0 : index
    %29 = vector.load %arg8[%c0_18, %c0_19] : memref<8x16xf32, #tpu.memory_space<vmem>>, vector<8x16xf32>
    tpu.vector_store %arg8[%c0_18, %c0_19], %13 {strides = array<i32>} : memref<8x16xf32, #tpu.memory_space<vmem>>, vector<8x16xf32>,
    %c0_20 = arith.constant 0 : index
    %c0_21 = arith.constant 0 : index
    %30 = vector.load %arg9[%c0_20, %c0_21] : memref<8x16xf32, #tpu.memory_space<vmem>>, vector<8x16xf32>
    tpu.vector_store %arg9[%c0_20, %c0_21], %14 {strides = array<i32>} : memref<8x16xf32, #tpu.memory_space<vmem>>, vector<8x16xf32>,
    return
  }
  func.func @transform_0(%arg0: i32) -> (i32, i32) {
    %c0_i32 = arith.constant 0 : i32
    %c0_i32_0 = arith.constant 0 : i32
    return %arg0, %c0_i32 : i32, i32
  }
  func.func @transform_1(%arg0: i32) -> (i32, i32) {
    %c0_i32 = arith.constant 0 : i32
    %c0_i32_0 = arith.constant 0 : i32
    return %arg0, %c0_i32 : i32, i32
  }
  func.func @transform_2(%arg0: i32) -> (i32, i32) {
    %c0_i32 = arith.constant 0 : i32
    %c0_i32_0 = arith.constant 0 : i32
    %c0_i32_1 = arith.constant 0 : i32
    return %c0_i32, %c0_i32_0 : i32, i32
  }
  func.func @transform_3(%arg0: i32) -> (i32, i32) {
    %c0_i32 = arith.constant 0 : i32
    %c0_i32_0 = arith.constant 0 : i32
    %c0_i32_1 = arith.constant 0 : i32
    return %c0_i32, %c0_i32_0 : i32, i32
  }
  func.func @transform_4(%arg0: i32) -> (i32, i32) {
    %c0_i32 = arith.constant 0 : i32
    %c0_i32_0 = arith.constant 0 : i32
    %c0_i32_1 = arith.constant 0 : i32
    return %c0_i32, %c0_i32_0 : i32, i32
  }
  func.func @transform_5(%arg0: i32) -> (i32, i32) {
    %c0_i32 = arith.constant 0 : i32
    %c0_i32_0 = arith.constant 0 : i32
    %c0_i32_1 = arith.constant 0 : i32
    return %c0_i32, %c0_i32_0 : i32, i32
  }
  func.func @transform_6(%arg0: i32) -> (i32, i32) {
    %c0_i32 = arith.constant 0 : i32
    %c0_i32_0 = arith.constant 0 : i32
    return %arg0, %c0_i32 : i32, i32
  }
  func.func @transform_7(%arg0: i32) -> (i32, i32) {
    %c0_i32 = arith.constant 0 : i32
    %c0_i32_0 = arith.constant 0 : i32
    return %arg0, %c0_i32 : i32, i32
  }
  func.func @transform_8(%arg0: i32) -> (i32, i32) {
    %c0_i32 = arith.constant 0 : i32
    %c0_i32_0 = arith.constant 0 : i32
    return %arg0, %c0_i32 : i32, i32
  }
}

</mosaic_0001>

<bundles_post_ra>
// kernel: _lambda_.1
= control target key start
LH: loop header
LB: loop body
LE: loop exit
PB: predicated region body
PF: predicated region fallthrough
CT: control target
= control target key end

     0   :  { %14 = vsyncpa [#allocation3], 0  ;;  %s1081_s0 = inlined_call_operand.hbm [shape: f32[8,32], index: 0, kind: input, shape index: {}]   ;;  %s1082_s1 = inlined_call_operand.hbm [shape: f32[8,16], index: 1, kind: input, shape index: {}]   ;;  %s1083_s2 = inlined_call_operand.hbm [shape: f32[32,64], index: 2, kind: input, shape index: {}]   ;;  %s1084_s3 = inlined_call_operand.hbm [shape: f32[1,64], index: 3, kind: input, shape index: {}]   ;;  %s1085_s4 = inlined_call_operand.hbm [shape: f32[64,32], index: 4, kind: input, shape index: {}]   ;;  %s1086_s5 = inlined_call_operand.hbm [shape: f32[1,32], index: 5, kind: input, shape index: {}]   ;;  %s1087_s6 = inlined_call_operand.hbm [shape: f32[8,16], index: 6, kind: output, shape index: {0}]   ;;  %s1088_s7 = inlined_call_operand.hbm [shape: f32[8,16], index: 7, kind: output, shape index: {1}]   ;;  %s1089_s8 = inlined_call_operand.hbm [shape: f32[8,16], index: 8, kind: output, shape index: {2}]  }
   0x1   :  { %15 = vsyncpa [#allocation6], 0 }
   0x2   :  { %16 = vsyncpa [#allocation9], 0 }
   0x3   :  { %17 = vsyncpa [#allocation12], 0 }
   0x4   :  { %18 = vsyncpa [#allocation4], 0 }
   0x5   :  { %19 = vsyncpa [#allocation15], 0  ;;  %s875_s27 = smov [#allocation5]   ;;  %s876_s29 = smov [#allocation8]  }
   0x6   :  { %s36_s28 = sshll.u32 %s875_s27, 4  ;;  %s58_s30 = sshll.u32 %s876_s29, 4  ;;  %s37_s28 = int_to_ptr.vmem [resolvable:$true] %s36_s28  ;;  %s59_s30 = int_to_ptr.vmem [resolvable:$true] %s58_s30 }
   0x7   :  { %s665_s11 = scalar_lea.hbm %s1082_s1, 128 }
   0x8   :  { %p666_p0 = scmp.ne.s32.totalorder %s1082_s1, %s665_s11  ;;  %p669_p1 = scmp.lt.u32.totalorder %s665_s11, %s1082_s1 }
   0xa   :  { %p671_p2 = pnand %p669_p1, %p666_p0 }
   0xc   :  { %674 = shalt.err (!%p671_p2)
}
   0xd   :  { %s675_s16 = scalar_lea.vmem %s37_s28, 128  ;;  %p680_p4 = scmp.lt.s32.totalorder %s37_s28, %s37_s28 }
   0xe   :  { %p676_p3 = scmp.ne.s32.totalorder %s37_s28, %s675_s16  ;;  %p681_p5 = scmp.lt.s32.totalorder %s675_s16, %s675_s16 }
  0x10   :  { %p682_p6 = por %p681_p5, %p680_p4 }
  0x12   :  { %p683_p7 = pnand %p682_p6, %p676_p3 }
  0x14   :  { %686 = shalt.err (!%p683_p7)
}
  0x15   :  { %39 = dma.hbm_to_vmem [thread:$0]  %s1082_s1, 128, %s37_s28, [#allocation6]  }
  0x16   :  { %s687_s21 = scalar_lea.hbm %s1084_s3, 16 }
  0x17   :  { %p688_p8 = scmp.ne.s32.totalorder %s1084_s3, %s687_s21  ;;  %p691_p9 = scmp.lt.u32.totalorder %s687_s21, %s1084_s3 }
  0x19   :  { %p693_p10 = pnand %p691_p9, %p688_p8 }
  0x1b   :  { %696 = shalt.err (!%p693_p10)
}
  0x1c   :  { %s697_s26 = scalar_lea.vmem %s59_s30, 16  ;;  %s701_s27 = scalar_lea.vmem %s59_s30, 32 }
  0x1d   :  { %p698_p11 = scmp.ne.s32.totalorder %s59_s30, %s697_s26  ;;  %p702_p12 = scmp.lt.s32.totalorder %s59_s30, %s59_s30 }
  0x1e   :  { %p703_p13 = scmp.lt.s32.totalorder %s701_s27, %s697_s26 }
  0x20   :  { %p704_p0 = por %p703_p13, %p702_p12 }
  0x22   :  { %p705_p1 = pnand %p704_p0, %p698_p11 }
  0x24   :  { %708 = shalt.err (!%p705_p1)
}
  0x25   :  { %61 = dma.hbm_to_vmem [thread:$0]  %s1084_s3, 16, %s59_s30, [#allocation9]  }
  0x26   :  { %s877_s29 = smov [#allocation2]   ;;  %s878_s10 = smov [#allocation7]  }
  0x27   :  { %s26_s9 = sshll.u32 %s877_s29, 4  ;;  %s45_s11 = sshll.u32 %s878_s10, 4  ;;  %s27_s9 = int_to_ptr.vmem [resolvable:$true] %s26_s9  ;;  %s966_s11 = int_to_ptr.vmem [resolvable:$true] %s45_s11 }
  0x28   :  { %s709_s14 = scalar_lea.hbm %s1081_s0, 128 }
  0x29   :  { %p710_p2 = scmp.ne.s32.totalorder %s1081_s0, %s709_s14  ;;  %p713_p3 = scmp.lt.u32.totalorder %s709_s14, %s1081_s0 }
  0x2b   :  { %p715_p4 = pnand %p713_p3, %p710_p2 }
  0x2d   :  { %718 = shalt.err (!%p715_p4)
}
  0x2e   :  { %s719_s3 = scalar_lea.vmem %s27_s9, 128  ;;  %p724_p6 = scmp.lt.s32.totalorder %s27_s9, %s27_s9 }
  0x2f   :  { %p720_p5 = scmp.ne.s32.totalorder %s27_s9, %s719_s3  ;;  %p725_p7 = scmp.lt.s32.totalorder %s719_s3, %s719_s3 }
  0x31   :  { %p726_p8 = por %p725_p7, %p724_p6 }
  0x33   :  { %p727_p9 = pnand %p726_p8, %p720_p5 }
  0x35   :  { %730 = shalt.err (!%p727_p9)
}
  0x36   :  { %29 = dma.hbm_to_vmem [thread:$0]  %s1081_s0, 128, %s27_s9, [#allocation3]  }
  0x37   :  { %s731_s22 = scalar_lea.hbm %s1083_s2, 512 }
  0x38   :  { %p732_p10 = scmp.ne.s32.totalorder %s1083_s2, %s731_s22  ;;  %p735_p11 = scmp.lt.u32.totalorder %s731_s22, %s1083_s2 }
  0x3a   :  { %p737_p12 = pnand %p735_p11, %p732_p10 }
  0x3c   :  { %740 = shalt.err (!%p737_p12)
}
  0x3d   :  { %s741_s27 = scalar_lea.vmem %s966_s11, 512  ;;  %p746_p0 = scmp.lt.s32.totalorder %s966_s11, %s966_s11 }
  0x3e   :  { %p742_p13 = scmp.ne.s32.totalorder %s966_s11, %s741_s27  ;;  %p747_p1 = scmp.lt.s32.totalorder %s741_s27, %s741_s27 }
  0x40   :  { %p748_p2 = por %p747_p1, %p746_p0 }
  0x42   :  { %p749_p3 = pnand %p748_p2, %p742_p13 }
  0x44   :  { %752 = shalt.err (!%p749_p3)
}
  0x45   :  { %s879_s0 = smov 128   ;;  %s880_s1 = smov 8  }
  0x46   :  { %51 = dma.hbm_to_vmem [thread:$0]  %s1083_s2, 512, %s966_s11, [#allocation6], %s879_s0, %s879_s0, %s880_s1  }
  0x47   :  { %s881_s9 = smov [#allocation10]   ;;  %s882_s12 = smov [#allocation11]  }
  0x48   :  { %s67_s10 = sshll.u32 %s881_s9, 4  ;;  %s80_s13 = sshll.u32 %s882_s12, 4  ;;  %s68_s10 = int_to_ptr.vmem [resolvable:$true] %s67_s10  ;;  %s81_s13 = int_to_ptr.vmem [resolvable:$true] %s80_s13 }
  0x49   :  { %s753_s16 = scalar_lea.hbm %s1085_s4, 1024 }
  0x4a   :  { %p754_p4 = scmp.ne.s32.totalorder %s1085_s4, %s753_s16  ;;  %p757_p5 = scmp.lt.u32.totalorder %s753_s16, %s1085_s4 }
  0x4c   :  { %p759_p6 = pnand %p757_p5, %p754_p4 }
  0x4e   :  { %762 = shalt.err (!%p759_p6)
}
  0x4f   :  { %s763_s2 = scalar_lea.vmem %s68_s10, 1024  ;;  %p768_p8 = scmp.lt.s32.totalorder %s68_s10, %s68_s10 }
  0x50   :  { %p764_p7 = scmp.ne.s32.totalorder %s68_s10, %s763_s2  ;;  %p769_p9 = scmp.lt.s32.totalorder %s763_s2, %s763_s2 }
  0x52   :  { %p770_p10 = por %p769_p9, %p768_p8 }
  0x54   :  { %p771_p11 = pnand %p770_p10, %p764_p7 }
  0x56   :  { %774 = shalt.err (!%p771_p11)
}
  0x57   :  { %73 = dma.hbm_to_vmem [thread:$0]  %s1085_s4, 1024, %s68_s10, [#allocation9], %s879_s0, %s879_s0, %s880_s1  }
  0x58   :  { %s775_s22 = scalar_lea.hbm %s1086_s5, 16 }
  0x59   :  { %p776_p12 = scmp.ne.s32.totalorder %s1086_s5, %s775_s22  ;;  %p779_p13 = scmp.lt.u32.totalorder %s775_s22, %s1086_s5 }
  0x5b   :  { %p781_p0 = pnand %p779_p13, %p776_p12 }
  0x5d   :  { %784 = shalt.err (!%p781_p0)
}
  0x5e   :  { %s785_s27 = scalar_lea.vmem %s81_s13, 16  ;;  %s789_s28 = scalar_lea.vmem %s81_s13, 32 }
  0x5f   :  { %p786_p1 = scmp.ne.s32.totalorder %s81_s13, %s785_s27  ;;  %p790_p2 = scmp.lt.s32.totalorder %s81_s13, %s81_s13 }
  0x60   :  { %p791_p3 = scmp.lt.s32.totalorder %s789_s28, %s785_s27 }
  0x62   :  { %p792_p4 = por %p791_p3, %p790_p2 }
  0x64   :  { %p793_p5 = pnand %p792_p4, %p786_p1 }
  0x66   :  { %796 = shalt.err (!%p793_p5)
}
  0x67   :  { %83 = dma.hbm_to_vmem [thread:$0]  %s1086_s5, 16, %s81_s13, [#allocation12]  }
  0x68   :  { %863 = dma.done.wait [#allocation3], 128  }
  0x69   :  { %864 = vsyncadd [#allocation3], 4294967168 }
  0x6a   :  { %865 = dma.done.wait [#allocation6], 640  }
  0x6b   :  { %866 = vsyncadd [#allocation6], 4294966656 }
  0x6c   :  { %867 = dma.done.wait [#allocation9], 1040  }
  0x6d   :  { %868 = vsyncadd [#allocation9], 4294966256 }
  0x6e   :  { %869 = dma.done.wait [#allocation12], 16  }
  0x6f   :  { %870 = vsyncadd [#allocation12], 4294967280  ;;  %v883_v0 = vmov 0.0|0.0   ;;  %vm884_vm0 = vmmov 0   ;;  %v885_v1 = vmov 0.0   ;;  %v103_v2 = vld [vmem:[#allocation7] sm:$0xff] }
  0x70   :  { %613 = vmatprep.subr.bf16.mxu0 %v883_v0  ;;  %591 = vmatprep.mubr.msk.f32.mxu0 %vm884_vm0, %v885_v1  ;;  %v104_v3 = vld [vmem:[#allocation7 + $0x8] sm:$0xff]  ;;  %v105_v4 = vld [vmem:[#allocation7 + $0x10] sm:$0xff]  ;;  %v106_v6 = vld [vmem:[#allocation7 + $0x18] sm:$0xff]  ;;  %vm114_vm1 = vcmask 261120   ;;  %v886_v35 = vmov 683565275  }
  0x71   :  { %619 = vmatprep.subr.bf16.mxu1 %v883_v0  ;;  %610 = vmatprep.mubr.msk.f32.mxu1 %vm884_vm0, %v885_v1  ;;  %v614_v5 = vpack.c.bf16 %v104_v3, %v103_v2  ;;  %v189_v7 = vld [vmem:[#allocation10] sm:$0xff]  ;;  %v190_v8 = vld [vmem:[#allocation10 + $0x8] sm:$0xff]  ;;  %v191_v9 = vld [vmem:[#allocation10 + $0x10] sm:$0xff]  ;;  %v617_v11 = vpack.c.bf16 %v106_v6, %v105_v4  ;;  %v887_v37 = vmov 2475754826   ;;  %s892_s5 = smov 16  }
  0x72   :  { %v192_v10 = vld [vmem:[#allocation10 + $0x18] sm:$0xff]  ;;  %v620_v12 = vpack.c.bf16 %v190_v8, %v189_v7  ;;  %v193_v14 = vld [vmem:[#allocation10 + $0x20] sm:$0xff]  ;;  %v194_v15 = vld [vmem:[#allocation10 + $0x28] sm:$0xff]  ;;  %v888_v39 = vmov 2131351028   ;;  %s893_s1 = smov 112  }
  0x73   :  { %615 = vmatpush3.bf16.msra.mxu0 %v614_v5  ;;  %v623_v13 = vpack.c.bf16 %v192_v10, %v191_v9  ;;  %v102_v16 = vld [vmem:[#allocation2] sm:$0xff]  ;;  %v626_v17 = vpack.c.bf16 %v194_v15, %v193_v14  ;;  %v196_v19 = vld [vmem:[#allocation10 + $0x38] sm:$0xff]  ;;  %v889_v41 = vmov 2102212464   ;;  %v890_v43 = vmov 920167782  }
  0x74   :  { %616 = vmatprep.subr.bf16.mxu0 %v883_v0  ;;  %621 = vmatpush3.bf16.msra.mxu1 %v620_v12  ;;  %v195_v18 = vld [vmem:[#allocation10 + $0x30] sm:$0xff]  ;;  %v891_v50 = vmov 1326507024   ;;  %s894_s29 = smov [#allocation14]  }
  0x75   :  { %622 = vmatprep.subr.bf16.mxu1 %v883_v0  ;;  %v629_v20 = vpack.c.bf16 %v196_v19, %v195_v18  ;;  %v278_v21 = vld [vmem:[#allocation5] sm:$0xff]  ;;  %s527_s9 = sshll.u32 %s894_s29, 4  ;;  %s528_s9 = int_to_ptr.vmem [resolvable:$true] %s527_s9 }
  0x76   :  { %v560_v22 = vadd.f32 -0.5, %v278_v21  ;;  %s797_s10 = scalar_lea.vmem %s528_s9, 128  ;;  %p802_p7 = scmp.lt.s32.totalorder %s528_s9, %s528_s9 }
  0x77   :  { %618 = vmatpush3.bf16.msra.mxu0 %v617_v11  ;;  %p798_p6 = scmp.ne.s32.totalorder %s528_s9, %s797_s10  ;;  %p803_p8 = scmp.lt.s32.totalorder %s797_s10, %s797_s10 }
  0x78   :  { %624 = vmatpush3.bf16.msra.mxu1 %v623_v13  ;;  %v1021_v23 = vmul.f32 3.14, %v560_v22 }
  0x79   :  { %625 = vmatprep.subr.bf16.mxu1 %v883_v0  ;;  %p804_p9 = por %p803_p8, %p802_p7 }
  0x7a   :  { %592 = vmatmul.mubr.msk.f32.vlgmr.msra.gmra.mrb[0].mxu0 %vm114_vm1, %v102_v16  ;;  %v287_v24 = vand.u32 2139095040, %v1021_v23  ;;  %v284_v26 = vand.u32 2147483647, %v1021_v23  ;;  %vm286_vm9 = vcmp.lt.s32.totalorder %v1021_v23, 0  ;;  %vm376_vm14 = vweird.f32 %v1021_v23 }
  0x7b   :  { %p805_p10 = pnand %p804_p9, %p798_p6 }
  0x7c   :  { %627 = vmatpush3.bf16.msra.mxu1 %v626_v17  ;;  %v288_v25 = vshrl.u32 %v287_v24, 23  ;;  %v291_v29 = vand.u32 8388607, %v284_v26  ;;  %vm285_vm10 = vcmp.le.f32.partialorder %v284_v26, 0.7853982 }
  0x7d   :  { %628 = vmatprep.subr.bf16.mxu1 %v883_v0 }
  0x7e   :  { %v561_v27 = vadd.s32 4294967169, %v288_v25  ;;  %v292_v32 = vor.u32 8388608, %v291_v29 }
  0x80   :  { %630 = vmatpush3.bf16.msra.mxu1 %v629_v20  ;;  %v294_v28 = vadd.s32 1, %v561_v27  ;;  %v332_v52 = vshll.u32 %v292_v32, 8 }
  0x82   :  { %vm295_vm2 = vcmp.gt.s32.totalorder %v294_v28, 0 }
  0x83   :  { %v296_v30 = vsel %vm295_vm2, %v294_v28, 0  ;;  %vm204_vm2 = vcmask 523264  }
  0x84   :  { %v298_v31 = vand.u32 31, %v296_v30  ;;  %v297_v33 = vshrl.u32 %v296_v30, 5 }
  0x86   :  { %v299_v34 = vsub.s32 32, %v298_v31  ;;  %v301_v36 = vshll.u32 %v886_v35, %v298_v31  ;;  %v304_v38 = vshll.u32 %v887_v37, %v298_v31  ;;  %v307_v40 = vshll.u32 %v888_v39, %v298_v31 }
  0x87   :  { %v310_v42 = vshll.u32 %v889_v41, %v298_v31  ;;  %v313_v44 = vshll.u32 %v890_v43, %v298_v31  ;;  %vm316_vm3 = vcmp.lt.s32.totalorder %v297_v33, 1  ;;  %vm319_vm4 = vcmp.lt.s32.totalorder %v297_v33, 4 }
  0x88   :  { %v300_v45 = vshrl.u32 %v886_v35, %v299_v34  ;;  %v302_v46 = vshrl.u32 %v887_v37, %v299_v34  ;;  %v305_v47 = vshrl.u32 %v888_v39, %v299_v34  ;;  %v308_v48 = vshrl.u32 %v889_v41, %v299_v34 }
  0x89   :  { %v311_v49 = vshrl.u32 %v890_v43, %v299_v34  ;;  %v314_v51 = vshrl.u32 %v891_v50, %v299_v34  ;;  %vm317_vm5 = vcmp.lt.s32.totalorder %v297_v33, 2  ;;  %vm318_vm6 = vcmp.lt.s32.totalorder %v297_v33, 3 }
  0x8a   :  { %v303_v53 = vor.u32 %v302_v46, %v301_v36  ;;  %v306_v54 = vor.u32 %v305_v47, %v304_v38  ;;  %v309_v55 = vor.u32 %v308_v48, %v307_v40 }
  0x8b   :  { %v312_v56 = vor.u32 %v311_v49, %v310_v42  ;;  %v315_v57 = vor.u32 %v314_v51, %v313_v44 }
  0x8c   :  { %v320_v58 = vsel %vm316_vm3, %v300_v45, %v303_v53  ;;  %v321_v59 = vsel %vm319_vm4, %v309_v55, 2102212464  ;;  %v324_v60 = vsel %vm316_vm3, %v303_v53, %v306_v54  ;;  %v328_v61 = vsel %vm316_vm3, %v306_v54, %v309_v55 }
  0x8d   :  { %v322_v62 = vsel %vm318_vm6, %v306_v54, %v321_v59  ;;  %v325_v63 = vsel %vm319_vm4, %v312_v56, 920167782  ;;  %v329_v0 = vsel %vm319_vm4, %v315_v57, 1326507024  ;;  %v556_v59 = vld [vmem:[#allocation8] ss:$0 sm:$0xff] }
  0x8e   :  { %v326_v1 = vsel %vm318_vm6, %v309_v55, %v325_v63  ;;  %v330_v2 = vsel %vm318_vm6, %v312_v56, %v329_v0  ;;  %v323_v3 = vsel %vm317_vm5, %v320_v58, %v322_v62  ;;  %v558_v63 = vld [vmem:[#allocation11] ss:$0 sm:$0xff]  ;;  %vm503_vm3 = vcmask 130048  }
  0x8f   :  { %v327_v4 = vsel %vm317_vm5, %v324_v60, %v326_v1  ;;  %v331_v5 = vsel %vm317_vm5, %v328_v61, %v330_v2  ;;  %v339_v10 = vmul.u32 %v332_v52, %v323_v3 }
  0x90   :  { %v1027_v6 = vmul.u32.u64.low %v332_v52, %v331_v5  ;;  %v1028_v7 = vmul.u32.u64.high %v332_v52, %v331_v5, %v1027_v6  ;;  %v1030_v8 = vmul.u32.u64.low %v332_v52, %v327_v4  ;;  %v1031_v9 = vmul.u32.u64.high %v332_v52, %v327_v4, %v1030_v8 }
  0x92   :  { %vm341_vm7 = vc.u32 %v1028_v7, %v1030_v8  ;;  %v342_v11 = vadd.s32 1, %v1031_v9  ;;  %v340_v22 = vadd.s32 %v1030_v8, %v1028_v7 }
  0x94   :  { %v343_v12 = vsel %vm341_vm7, %v342_v11, %v1031_v9 }
  0x95   :  { %v344_v13 = vadd.s32 %v343_v12, %v339_v10 }
  0x97   :  { %v345_v14 = vadd.s32 536870912, %v344_v13 }
  0x99   :  { %v346_v15 = vshrl.u32 %v345_v14, 30 }
  0x9b   :  { %v347_v16 = vshll.u32 %v346_v15, 30  ;;  %v370_v38 = vsub.s32 4, %v346_v15 }
  0x9d   :  { %v348_v17 = vsub.s32 %v344_v13, %v347_v16  ;;  %v371_v41 = vsel %vm286_vm9, %v370_v38, %v346_v15 }
  0x9e   :  { %v373_v42 = vsel %vm285_vm10, 0, %v371_v41 }
  0x9f   :  { %v350_v18 = vsub.s32 0, %v348_v17  ;;  %v481_v43 = vand.u32 3, %v373_v42  ;;  %v377_v44 = vadd.s32 3, %v373_v42 }
  0xa1   :  { %v562_v19 = vmin.u32 %v350_v18, %v348_v17  ;;  %vm486_vm11 = vcmp.eq.s32.totalorder %v481_v43, 2  ;;  %vm483_vm12 = vcmp.eq.s32.totalorder %v481_v43, 0  ;;  %v378_v48 = vand.u32 3, %v377_v44 }
  0xa2   :  { %vm482_vm13 = vcmp.lt.s32.totalorder %v481_v43, 2 }
  0xa3   :  { %v352_v20 = vclz %v562_v19  ;;  %vm380_vm15 = vcmp.eq.s32.totalorder %v378_v48, 0  ;;  %vm383_vm0 = vcmp.eq.s32.totalorder %v378_v48, 2  ;;  %vm379_vm1 = vcmp.lt.s32.totalorder %v378_v48, 2 }
  0xa5   :  { %v563_v21 = vadd.s32 4294967294, %v352_v20 }
  0xa7   :  { %vm564_vm8 = vcmp.lt.s32.totalorder %v563_v21, 0 }
  0xa8   :  { %v355_v24 = vsel %vm564_vm8, 0, %v563_v21 }
  0xa9   :  { %v356_v25 = vsub.s32 32, %v355_v24  ;;  %v357_v27 = vshll.u32 %v348_v17, %v355_v24  ;;  %v360_v28 = vsub.s32 4294967266, %v355_v24 }
  0xab   :  { %v358_v29 = vshrl.u32 %v340_v22, %v356_v25  ;;  %v361_v30 = vadd.s32 127, %v360_v28 }
  0xad   :  { %v359_v31 = vor.u32 %v358_v29, %v357_v27  ;;  %v362_v32 = vshll.u32 %v361_v30, 23 }
  0xaf   :  { %v363_v33 = vor.u32 4788187, %v362_v32  ;;  %v366_v34 = vcvt.s32.f32 %v359_v31 }
  0xb1   :  { %v364_v35 = vand.u32 2147483647, %v363_v33 }
  0xb3   :  { %v367_v36 = vmul.f32 %v366_v34, %v364_v35 }
  0xb5   :  { %v368_v37 = vxor.u32 2147483648, %v367_v36 }
  0xb7   :  { %v369_v39 = vsel %vm286_vm9, %v368_v37, %v367_v36 }
  0xb8   :  { %v372_v40 = vsel %vm285_vm10, %v1021_v23, %v369_v39 }
  0xb9   :  { %657 = vcosq.f32 %v372_v40 }
  0xba   :  { %659 = vsinq.f32 %v372_v40 }
  0xc3   :  { %v658_v45 = vpop.eup %657 }
  0xc4   :  { %v660_v46 = vpop.eup %659  ;;  %v384_v47 = vxor.u32 2147483648, %v658_v45 }
  0xc5   :  { %v381_v49 = vxor.u32 2147483648, %v660_v46 }
  0xc6   :  { %v488_v26 = vsel %vm486_vm11, %v384_v47, %v660_v46  ;;  %v385_v54 = vsel %vm383_vm0, %v384_v47, %v660_v46 }
  0xc7   :  { %v485_v50 = vsel %vm483_vm12, %v658_v45, %v381_v49  ;;  %v382_v53 = vsel %vm380_vm15, %v658_v45, %v381_v49 }
  0xc8   :  { %v489_v51 = vsel %vm482_vm13, %v485_v50, %v488_v26  ;;  %v386_v55 = vsel %vm379_vm1, %v382_v53, %v385_v54 }
  0xc9   :  { %v490_v52 = vsel %vm376_vm14, nan, %v489_v51  ;;  %v387_v56 = vsel %vm376_vm14, nan, %v386_v55 }
  0xca   :  { %661 = vrcp.f32 %v490_v52 }
  0xd4   :  { %v662_v57 = vpop.eup %661 }
  0xd5   :  { %v492_v58 = vmul.f32 %v662_v57, %v387_v56 }
  0xd7   :  { %494 = vrot.lane.b32.xlu0 %v492_v58, %s892_s5 }
 0x14d   :  { %v184_v60 = vpop.f32.mrb[0].mxu0 }
 0x14e   :  { %v185_v61 = vadd.f32 %v556_v59, %v184_v60  ;;  %v593_v23 = vpop.f32.mrb[1].mxu0 }
 0x150   :  { %v188_v62 = vmax.f32 %v185_v61, 0.0 }
 0x152   :  { %611 = vmatmul.mubr.msk.f32.vlgmr.msra.gmra.mrb[0].mxu1 %vm204_vm2, %v188_v62 }
 0x225   :  { %v274_v0 = vpop.f32.mrb[0].mxu1 }
 0x226   :  { %v275_v1 = vadd.f32 %v558_v63, %v274_v0  ;;  %v612_v2 = vpop.f32.mrb[1].mxu1 }
 0x228   :  { %v279_v3 = vmul.f32 0.5, %v275_v1  ;;  %507 = vrot.lane.b32.xlu1 %v275_v1, %s893_s1  ;;  %505 = vst.msk [vmem:[#allocation14] sm:$0xff] %vm503_vm3, %v275_v1 }
 0x22a   :  { %v280_v4 = vmul.f32 1.442695, %v279_v3 }
 0x22c   :  { %663 = vpow2.f32 %v280_v4 }
 0x22d   :  { %808 = shalt.err (!%p805_p10)
}
 0x22e   :  { %s809_s14 = scalar_lea.hbm %s1088_s7, 128 }
 0x22f   :  { %p810_p11 = scmp.ne.s32.totalorder %s1088_s7, %s809_s14  ;;  %p813_p12 = scmp.lt.u32.totalorder %s809_s14, %s1088_s7 }
 0x231   :  { %p815_p13 = pnand %p813_p12, %p810_p11 }
 0x233   :  { %818 = shalt.err (!%p815_p13)
}
 0x234   :  { %530 = dma.vmem_to_hbm [thread:$0]  %s528_s9, 128, %s1088_s7, [#allocation15]   ;;  %v495_v5 = vpop.permute.xlu0 %494 }
 0x235   :  { %s895_s2 = smov [#allocation16]  }
 0x236   :  { %v664_v6 = vpop.eup %663  ;;  %s537_s11 = sshll.u32 %s895_s2, 4  ;;  %s538_s11 = int_to_ptr.vmem [resolvable:$true] %s537_s11 }
 0x237   :  { %v497_v7 = vmul.f32 %v664_v6, %v495_v5  ;;  %s819_s19 = scalar_lea.vmem %s538_s11, 128  ;;  %p824_p1 = scmp.lt.s32.totalorder %s538_s11, %s538_s11 }
 0x238   :  { %p820_p0 = scmp.ne.s32.totalorder %s538_s11, %s819_s19  ;;  %p825_p2 = scmp.lt.s32.totalorder %s819_s19, %s819_s19 }
 0x239   :  { %499 = vrot.lane.b32.xlu0 %v497_v7, %s893_s1 }
 0x23a   :  { %p826_p3 = por %p825_p2, %p824_p1 }
 0x23c   :  { %p827_p4 = pnand %p826_p3, %p820_p0 }
 0x29a   :  { %v508_v8 = vpop.permute.xlu1 %507 }
 0x29b   :  { %510 = vst.msk [vmem:[#allocation16] sm:$0xff] %vm503_vm3, %v508_v8 }
 0x29c   :  { %830 = shalt.err (!%p827_p4)
}
 0x29d   :  { %s831_s7 = scalar_lea.hbm %s1089_s8, 128 }
 0x29e   :  { %p832_p5 = scmp.ne.s32.totalorder %s1089_s8, %s831_s7  ;;  %p835_p6 = scmp.lt.u32.totalorder %s831_s7, %s1089_s8 }
 0x2a0   :  { %p837_p7 = pnand %p835_p6, %p832_p5 }
 0x2a2   :  { %840 = shalt.err (!%p837_p7)
}
 0x2a3   :  { %540 = dma.vmem_to_hbm [thread:$0]  %s538_s11, 128, %s1089_s8, [#allocation15]  }
 0x2a4   :  { %s896_s28 = smov [#allocation13]  }
 0x2a5   :  { %s517_s4 = sshll.u32 %s896_s28, 4  ;;  %s518_s4 = int_to_ptr.vmem [resolvable:$true] %s517_s4 }
 0x2a6   :  { %s841_s0 = scalar_lea.vmem %s518_s4, 128  ;;  %p846_p9 = scmp.lt.s32.totalorder %s518_s4, %s518_s4 }
 0x2a7   :  { %p842_p8 = scmp.ne.s32.totalorder %s518_s4, %s841_s0  ;;  %p847_p10 = scmp.lt.s32.totalorder %s841_s0, %s841_s0 }
 0x2a9   :  { %p848_p11 = por %p847_p10, %p846_p9 }
 0x2ab   :  { %v500_v9 = vpop.permute.xlu0 %499  ;;  %p849_p12 = pnand %p848_p11, %p842_p8 }
 0x2ac   :  { %v502_v10 = vadd.f32 %v500_v9, %v275_v1 }
 0x2ae   :  { %504 = vst.msk [vmem:[#allocation13] sm:$0xff] %vm503_vm3, %v502_v10 }
 0x2af   :  { %852 = shalt.err (!%p849_p12)
}
 0x2b0   :  { %s853_s29 = scalar_lea.hbm %s1087_s6, 128 }
 0x2b1   :  { %p854_p13 = scmp.ne.s32.totalorder %s1087_s6, %s853_s29  ;;  %p857_p0 = scmp.lt.u32.totalorder %s853_s29, %s1087_s6 }
 0x2b3   :  { %p859_p1 = pnand %p857_p0, %p854_p13 }
 0x2b5   :  { %862 = shalt.err (!%p859_p1)
}
 0x2b6   :  { %520 = dma.vmem_to_hbm [thread:$0]  %s518_s4, 128, %s1087_s6, [#allocation4]  }
 0x2b7   :  { %871 = dma.done.wait [#allocation4], 128  }
 0x2b8   :  { %872 = vsyncadd [#allocation4], 4294967168 }
 0x2b9   :  { %873 = dma.done.wait [#allocation15], 256  }
 0x2ba   :  { %874 = vsyncadd [#allocation15], 4294967040 }
 0x2bb   :  { %550 = vsyncpa [#allocation3], 1 }
 0x2bc   :  { %551 = vsyncpa [#allocation6], 1 }
 0x2bd   :  { %552 = vsyncpa [#allocation9], 1 }
 0x2be   :  { %553 = vsyncpa [#allocation12], 1 }
 0x2bf   :  { %554 = vsyncpa [#allocation4], 1 }
 0x2c0   :  { %555 = vsyncpa [#allocation15], 1 }

</bundles_post_ra>
